<compile_context>
chip_gen: v7x
topology: tpu7x:2x2x1
jax: 0.10.0
libtpu: 0.0.40
codegen_flags: <defaults>
</compile_context>

<pallas_src>
import math

import jax
import jax.numpy as jnp
from jax.experimental import pallas as pl
from jax.experimental.pallas import tpu as pltpu

_ON_TPU = jax.default_backend() == "tpu"

MAX_ROW_TILE = 2048   # 2048 x 512 x 4B = 4 MiB output tile (8 MiB double-buffered)
CHUNK_ROWS = 256      # in-kernel sub-slab: bounded vreg pressure, streaming stores

# int32 (two's-complement) views of the uint32 mixing constants
_C1 = -2048144789     # 0x85ebca6b (murmur3 fmix)
_C2 = -1028477387     # 0xc2b2ae35 (murmur3 fmix)
_GOLD = -1640531527   # 0x9e3779b9 (golden-ratio increment)
_SALT_A = 0x5bd1e995
_SALT_B = 0x27d4eb2f
_INV_2_24 = 1.0 / float(1 << 24)
_TWO_PI = 2.0 * math.pi


def _fmix32(h):
    """murmur3 finalizer on int32 arrays (wrapping int32 arithmetic == uint32)."""
    h = h ^ ((h >> 16) & 0xFFFF)          # logical >> 16
    h = h * _C1
    h = h ^ ((h >> 13) & 0x7FFFF)         # logical >> 13
    h = h * _C2
    h = h ^ ((h >> 16) & 0xFFFF)
    return h


def _hashed_normal_block(seed, row_start, n_rows, n_cols):
    """Portable ~N(0,1) block: counter-based hash of (seed, row, col) + Box-Muller.

    Only used where the TPU hardware PRNG is unavailable (CPU / interpret mode);
    tiling-invariant since every value depends only on (seed, global row, col).
    """
    r = jax.lax.broadcasted_iota(jnp.int32, (n_rows, n_cols), 0) + row_start
    c = jax.lax.broadcasted_iota(jnp.int32, (n_rows, n_cols), 1)
    h = _fmix32(seed + r * _GOLD)
    h = _fmix32(h ^ (c * _C1))
    b1 = _fmix32(h ^ _SALT_A)
    b2 = _fmix32(h ^ _SALT_B)
    u1 = 1.0 - ((b1 >> 8) & 0xFFFFFF).astype(jnp.float32) * _INV_2_24   # (0, 1]
    u2 = ((b2 >> 8) & 0xFFFFFF).astype(jnp.float32) * _INV_2_24         # [0, 1)
    rad = jnp.sqrt(-2.0 * jnp.log(u1))
    return rad * jnp.cos(_TWO_PI * u2)


def _normal_fill_kernel(seed_ref, out_ref):
    # seed_ref: SMEM int32 (1,)  -- scalar-prefetched base seed
    # out_ref : VMEM f32 (row_tile, cols) -- current output tile
    row_tile, cols = out_ref.shape
    block_row0 = pl.program_id(0) * row_tile

    if _ON_TPU:
        # Hardware PRNG; reseed per tile so grid steps are independent of ordering
        # and of which TensorCore runs them ("parallel" dimension semantics).
        pltpu.prng_seed(seed_ref[0] + pl.program_id(0) * _GOLD)
        gen = lambda r0, nr: pltpu.stateful_normal((nr, cols), jnp.float32)
    else:
        seed = seed_ref[0]
        gen = lambda r0, nr: _hashed_normal_block(seed, block_row0 + r0, nr, cols)

    if row_tile >= CHUNK_ROWS and row_tile % CHUNK_ROWS == 0:
        # Fill the (up to 4 MiB) tile in 256-row sub-slabs streamed straight into
        # out_ref: bounded vreg pressure, no full-tile VMEM temp.
        n_chunks = row_tile // CHUNK_ROWS

        def body(chunk, carry):
            r0 = chunk * CHUNK_ROWS
            if _ON_TPU:
                r0 = pl.multiple_of(r0, CHUNK_ROWS)
            out_ref[pl.ds(r0, CHUNK_ROWS), :] = gen(r0, CHUNK_ROWS)
            return carry

        jax.lax.fori_loop(0, n_chunks, body, 0)
    else:
        out_ref[...] = gen(0, row_tile)


def _round_up(x, m):
    return ((x + m - 1) // m) * m


def online_embedding_forward(n, d, seed):
    """Fresh standard-normal embedding table forward: f32 (n, d) ~ N(0, 1).

    n    : number of lookups (input.numel()); the table has exactly n rows and is
           gathered with arange(n), so the output equals the table itself.
    d    : embedding_dim
    seed : int32 (1,) base PRNG seed
    """
    total = n * d
    # Lane-dense slab width (multiple of 128 -> unmasked full-width stores).  Prefer
    # a width that divides n*d exactly so no post-kernel slice/copy is needed.
    if total % 512 == 0:
        cols = 512
    elif total % 256 == 0:
        cols = 256
    else:
        cols = 128
    exact = total % cols == 0
    rows = total // cols if exact else pl.cdiv(total, cols)

    if rows <= 8:
        row_tile = rows                      # tiny case: single full block
    else:
        # Target >= ~8 grid steps (keeps both v7x TensorCores busy + pipelining),
        # sublane-aligned, capped at 2048 rows (4 MiB tile; 8 MiB double-buffered
        # fits v5e's 16 MiB default scoped VMEM).
        rt = _round_up(pl.cdiv(rows, 8), 8)
        if rt >= CHUNK_ROWS:
            rt = _round_up(rt, CHUNK_ROWS)
        row_tile = min(MAX_ROW_TILE, rt)
    grid = pl.cdiv(rows, row_tile)

    flat = pl.pallas_call(
        _normal_fill_kernel,
        out_shape=jax.ShapeDtypeStruct((rows, cols), jnp.float32),
        grid_spec=pltpu.PrefetchScalarGridSpec(
            num_scalar_prefetch=1,
            grid=(grid,),
            in_specs=[],
            out_specs=pl.BlockSpec((row_tile, cols), lambda i, seed: (i, 0)),
        ),
        compiler_params=pltpu.CompilerParams(
            dimension_semantics=("parallel",),
        ),
        cost_estimate=pl.CostEstimate(
            flops=48 * rows * cols,
            transcendentals=3 * rows * cols,
            bytes_accessed=4 * rows * cols,
        ),
    )(seed.astype(jnp.int32))

    if exact:
        # Free row-major reshape of the lane-dense slab; no slice, no extra HBM copy.
        return flat.reshape(n, d)
    # TODO(synk): irregular n*d (not a multiple of 128) pays one extra HBM copy here.
    return flat.reshape(-1)[:total].reshape(n, d)


class OnlineEmbeddingPallas:
    """JAX/Pallas port of OnlineEmbedding (hash-table-miss / fresh-init path)."""

    def __init__(self, num_embeddings, embedding_dim, padding_idx=None,
                 max_norm=None, norm_type=2.0, scale_grad_by_freq=False, sparse=False):
        # num_embeddings is unused (kept for API compatibility, like the PyTorch module)
        self.embedding_dim = embedding_dim
        self.padding_idx = padding_idx     # affects gradients only; forward unchanged
        self.max_norm = max_norm           # PyTorch default None; renorm not applied
        # TODO(synk): merlin_kv HashTable find/insert has no Pallas equivalent; the
        # PyTorch reference falls through (`except: pass`) to the fresh normal init,
        # which is exactly what the fused RNG kernel produces.

    def __call__(self, input_ids, key):
        n = int(input_ids.size)            # input.view(-1, 1).shape[0]
        seed = jax.random.randint(
            key, (1,), minval=0, maxval=jnp.iinfo(jnp.int32).max, dtype=jnp.int32)
        # continue_input = arange(n) gather of an n-row fresh table == the table
        # itself, generated directly in-kernel (no separate weight tensor in HBM).
        return online_embedding_forward(n, self.embedding_dim, seed)


if __name__ == "__main__":
    key = jax.random.PRNGKey(0)
    k_ids, k_w, k_ids2, k_w2 = jax.random.split(key, 4)

    embedding_dim = 32
    emb = OnlineEmbeddingPallas(num_embeddings=2**31, embedding_dim=embedding_dim)

    # Small case (single block): 2*4*8 = 64 lookups -> (64, 32) output.
    input_ids = jax.random.randint(k_ids, (2, 4, 8), 0, 1_000_000, dtype=jnp.int32)
    out = jax.block_until_ready(emb(input_ids, k_w))
    n = int(input_ids.size)
    assert out.shape == (n, embedding_dim), out.shape
    assert out.dtype == jnp.float32, out.dtype
    assert bool(jnp.all(jnp.isfinite(out))), "non-finite values in output"
    mean = float(jnp.mean(out))
    std = float(jnp.std(out))
    assert abs(mean) < 0.25, f"mean {mean} not ~0"
    assert 0.75 < std < 1.25, f"std {std} not ~1"

    # Slightly larger case (multi-step grid, still small): 1024 lookups -> (1024, 32).
    input_ids2 = jax.random.randint(k_ids2, (2, 16, 32), 0, 1_000_000, dtype=jnp.int32)
    out2 = jax.block_until_ready(emb(input_ids2, k_w2))
    n2 = int(input_ids2.size)
    assert out2.shape == (n2, embedding_dim), out2.shape
    assert bool(jnp.all(jnp.isfinite(out2))), "non-finite values in output2"
    mean2 = float(jnp.mean(out2))
    std2 = float(jnp.std(out2))
    assert abs(mean2) < 0.1, f"mean {mean2} not ~0"
    assert 0.9 < std2 < 1.1, f"std {std2} not ~1"

    print("KERNEL_OK")
</pallas_src>

<mosaic_0001>
module attributes {stable_mosaic.version = 11 : i64} {
  func.func @_normal_fill_kernel(%arg0: i32, %arg1: memref<1xi32, #tpu.memory_space<smem>>, %arg2: memref<4x512xf32, #tpu.memory_space<vmem>>) attributes {dimension_semantics = [#tpu.dimension_semantics<parallel>], iteration_bounds = array<i64: 1>, scalar_prefetch = 1 : i64, scratch_operands = 0 : i64, tpu.core_type = #tpu.core_type<tc>, window_params = [{transform_indices = @transform_0, window_bounds = array<i64: 4, 512>}]} {
    %c4_i32 = arith.constant 4 : i32
    %0 = arith.muli %arg0, %c4_i32 : i32
    %c0 = arith.constant 0 : index
    %1 = memref.load %arg1[%c0] : memref<1xi32, #tpu.memory_space<smem>>
    %c0_i32 = arith.constant 0 : i32
    %2 = arith.addi %0, %c0_i32 : i32
    %3 = tpu.iota {dimensions = array<i32: 0>} : vector<4x512xi32>
    %4 = vector.broadcast %2 : i32 to vector<4x512xi32>
    %5 = arith.addi %3, %4 : vector<4x512xi32>
    %6 = tpu.iota {dimensions = array<i32: 1>} : vector<4x512xi32>
    %c-1640531527_i32 = arith.constant -1640531527 : i32
    %7 = vector.broadcast %c-1640531527_i32 : i32 to vector<4x512xi32>
    %8 = arith.muli %5, %7 : vector<4x512xi32>
    %9 = vector.broadcast %1 : i32 to vector<4x512xi32>
    %10 = arith.addi %9, %8 : vector<4x512xi32>
    %c16_i32 = arith.constant 16 : i32
    %11 = vector.broadcast %c16_i32 : i32 to vector<4x512xi32>
    %12 = arith.shrsi %10, %11 : vector<4x512xi32>
    %c65535_i32 = arith.constant 65535 : i32
    %13 = vector.broadcast %c65535_i32 : i32 to vector<4x512xi32>
    %14 = arith.andi %12, %13 : vector<4x512xi32>
    %15 = arith.xori %10, %14 : vector<4x512xi32>
    %c-2048144789_i32 = arith.constant -2048144789 : i32
    %16 = vector.broadcast %c-2048144789_i32 : i32 to vector<4x512xi32>
    %17 = arith.muli %15, %16 : vector<4x512xi32>
    %c13_i32 = arith.constant 13 : i32
    %18 = vector.broadcast %c13_i32 : i32 to vector<4x512xi32>
    %19 = arith.shrsi %17, %18 : vector<4x512xi32>
    %c524287_i32 = arith.constant 524287 : i32
    %20 = vector.broadcast %c524287_i32 : i32 to vector<4x512xi32>
    %21 = arith.andi %19, %20 : vector<4x512xi32>
    %22 = arith.xori %17, %21 : vector<4x512xi32>
    %c-1028477387_i32 = arith.constant -1028477387 : i32
    %23 = vector.broadcast %c-1028477387_i32 : i32 to vector<4x512xi32>
    %24 = arith.muli %22, %23 : vector<4x512xi32>
    %c16_i32_0 = arith.constant 16 : i32
    %25 = vector.broadcast %c16_i32_0 : i32 to vector<4x512xi32>
    %26 = arith.shrsi %24, %25 : vector<4x512xi32>
    %c65535_i32_1 = arith.constant 65535 : i32
    %27 = vector.broadcast %c65535_i32_1 : i32 to vector<4x512xi32>
    %28 = arith.andi %26, %27 : vector<4x512xi32>
    %29 = arith.xori %24, %28 : vector<4x512xi32>
    %c-2048144789_i32_2 = arith.constant -2048144789 : i32
    %30 = vector.broadcast %c-2048144789_i32_2 : i32 to vector<4x512xi32>
    %31 = arith.muli %6, %30 : vector<4x512xi32>
    %32 = arith.xori %29, %31 : vector<4x512xi32>
    %c16_i32_3 = arith.constant 16 : i32
    %33 = vector.broadcast %c16_i32_3 : i32 to vector<4x512xi32>
    %34 = arith.shrsi %32, %33 : vector<4x512xi32>
    %c65535_i32_4 = arith.constant 65535 : i32
    %35 = vector.broadcast %c65535_i32_4 : i32 to vector<4x512xi32>
    %36 = arith.andi %34, %35 : vector<4x512xi32>
    %37 = arith.xori %32, %36 : vector<4x512xi32>
    %c-2048144789_i32_5 = arith.constant -2048144789 : i32
    %38 = vector.broadcast %c-2048144789_i32_5 : i32 to vector<4x512xi32>
    %39 = arith.muli %37, %38 : vector<4x512xi32>
    %c13_i32_6 = arith.constant 13 : i32
    %40 = vector.broadcast %c13_i32_6 : i32 to vector<4x512xi32>
    %41 = arith.shrsi %39, %40 : vector<4x512xi32>
    %c524287_i32_7 = arith.constant 524287 : i32
    %42 = vector.broadcast %c524287_i32_7 : i32 to vector<4x512xi32>
    %43 = arith.andi %41, %42 : vector<4x512xi32>
    %44 = arith.xori %39, %43 : vector<4x512xi32>
    %c-1028477387_i32_8 = arith.constant -1028477387 : i32
    %45 = vector.broadcast %c-1028477387_i32_8 : i32 to vector<4x512xi32>
    %46 = arith.muli %44, %45 : vector<4x512xi32>
    %c16_i32_9 = arith.constant 16 : i32
    %47 = vector.broadcast %c16_i32_9 : i32 to vector<4x512xi32>
    %48 = arith.shrsi %46, %47 : vector<4x512xi32>
    %c65535_i32_10 = arith.constant 65535 : i32
    %49 = vector.broadcast %c65535_i32_10 : i32 to vector<4x512xi32>
    %50 = arith.andi %48, %49 : vector<4x512xi32>
    %51 = arith.xori %46, %50 : vector<4x512xi32>
    %c1540483477_i32 = arith.constant 1540483477 : i32
    %52 = vector.broadcast %c1540483477_i32 : i32 to vector<4x512xi32>
    %53 = arith.xori %51, %52 : vector<4x512xi32>
    %c16_i32_11 = arith.constant 16 : i32
    %54 = vector.broadcast %c16_i32_11 : i32 to vector<4x512xi32>
    %55 = arith.shrsi %53, %54 : vector<4x512xi32>
    %c65535_i32_12 = arith.constant 65535 : i32
    %56 = vector.broadcast %c65535_i32_12 : i32 to vector<4x512xi32>
    %57 = arith.andi %55, %56 : vector<4x512xi32>
    %58 = arith.xori %53, %57 : vector<4x512xi32>
    %c-2048144789_i32_13 = arith.constant -2048144789 : i32
    %59 = vector.broadcast %c-2048144789_i32_13 : i32 to vector<4x512xi32>
    %60 = arith.muli %58, %59 : vector<4x512xi32>
    %c13_i32_14 = arith.constant 13 : i32
    %61 = vector.broadcast %c13_i32_14 : i32 to vector<4x512xi32>
    %62 = arith.shrsi %60, %61 : vector<4x512xi32>
    %c524287_i32_15 = arith.constant 524287 : i32
    %63 = vector.broadcast %c524287_i32_15 : i32 to vector<4x512xi32>
    %64 = arith.andi %62, %63 : vector<4x512xi32>
    %65 = arith.xori %60, %64 : vector<4x512xi32>
    %c-1028477387_i32_16 = arith.constant -1028477387 : i32
    %66 = vector.broadcast %c-1028477387_i32_16 : i32 to vector<4x512xi32>
    %67 = arith.muli %65, %66 : vector<4x512xi32>
    %c16_i32_17 = arith.constant 16 : i32
    %68 = vector.broadcast %c16_i32_17 : i32 to vector<4x512xi32>
    %69 = arith.shrsi %67, %68 : vector<4x512xi32>
    %c65535_i32_18 = arith.constant 65535 : i32
    %70 = vector.broadcast %c65535_i32_18 : i32 to vector<4x512xi32>
    %71 = arith.andi %69, %70 : vector<4x512xi32>
    %72 = arith.xori %67, %71 : vector<4x512xi32>
    %c668265263_i32 = arith.constant 668265263 : i32
    %73 = vector.broadcast %c668265263_i32 : i32 to vector<4x512xi32>
    %74 = arith.xori %51, %73 : vector<4x512xi32>
    %c16_i32_19 = arith.constant 16 : i32
    %75 = vector.broadcast %c16_i32_19 : i32 to vector<4x512xi32>
    %76 = arith.shrsi %74, %75 : vector<4x512xi32>
    %c65535_i32_20 = arith.constant 65535 : i32
    %77 = vector.broadcast %c65535_i32_20 : i32 to vector<4x512xi32>
    %78 = arith.andi %76, %77 : vector<4x512xi32>
    %79 = arith.xori %74, %78 : vector<4x512xi32>
    %c-2048144789_i32_21 = arith.constant -2048144789 : i32
    %80 = vector.broadcast %c-2048144789_i32_21 : i32 to vector<4x512xi32>
    %81 = arith.muli %79, %80 : vector<4x512xi32>
    %c13_i32_22 = arith.constant 13 : i32
    %82 = vector.broadcast %c13_i32_22 : i32 to vector<4x512xi32>
    %83 = arith.shrsi %81, %82 : vector<4x512xi32>
    %c524287_i32_23 = arith.constant 524287 : i32
    %84 = vector.broadcast %c524287_i32_23 : i32 to vector<4x512xi32>
    %85 = arith.andi %83, %84 : vector<4x512xi32>
    %86 = arith.xori %81, %85 : vector<4x512xi32>
    %c-1028477387_i32_24 = arith.constant -1028477387 : i32
    %87 = vector.broadcast %c-1028477387_i32_24 : i32 to vector<4x512xi32>
    %88 = arith.muli %86, %87 : vector<4x512xi32>
    %c16_i32_25 = arith.constant 16 : i32
    %89 = vector.broadcast %c16_i32_25 : i32 to vector<4x512xi32>
    %90 = arith.shrsi %88, %89 : vector<4x512xi32>
    %c65535_i32_26 = arith.constant 65535 : i32
    %91 = vector.broadcast %c65535_i32_26 : i32 to vector<4x512xi32>
    %92 = arith.andi %90, %91 : vector<4x512xi32>
    %93 = arith.xori %88, %92 : vector<4x512xi32>
    %c8_i32 = arith.constant 8 : i32
    %94 = vector.broadcast %c8_i32 : i32 to vector<4x512xi32>
    %95 = arith.shrsi %72, %94 : vector<4x512xi32>
    %c16777215_i32 = arith.constant 16777215 : i32
    %96 = vector.broadcast %c16777215_i32 : i32 to vector<4x512xi32>
    %97 = arith.andi %95, %96 : vector<4x512xi32>
    %98 = arith.sitofp %97 : vector<4x512xi32> to vector<4x512xf32>
    %cst = arith.constant 5.96046448E-8 : f32
    %99 = vector.broadcast %cst : f32 to vector<4x512xf32>
    %100 = arith.mulf %98, %99 : vector<4x512xf32>
    %cst_27 = arith.constant 1.000000e+00 : f32
    %101 = vector.broadcast %cst_27 : f32 to vector<4x512xf32>
    %102 = arith.subf %101, %100 : vector<4x512xf32>
    %c8_i32_28 = arith.constant 8 : i32
    %103 = vector.broadcast %c8_i32_28 : i32 to vector<4x512xi32>
    %104 = arith.shrsi %93, %103 : vector<4x512xi32>
    %c16777215_i32_29 = arith.constant 16777215 : i32
    %105 = vector.broadcast %c16777215_i32_29 : i32 to vector<4x512xi32>
    %106 = arith.andi %104, %105 : vector<4x512xi32>
    %107 = arith.sitofp %106 : vector<4x512xi32> to vector<4x512xf32>
    %cst_30 = arith.constant 5.96046448E-8 : f32
    %108 = vector.broadcast %cst_30 : f32 to vector<4x512xf32>
    %109 = arith.mulf %107, %108 : vector<4x512xf32>
    %110 = math.log %102 : vector<4x512xf32>
    %cst_31 = arith.constant -2.000000e+00 : f32
    %111 = vector.broadcast %cst_31 : f32 to vector<4x512xf32>
    %112 = arith.mulf %111, %110 : vector<4x512xf32>
    %113 = math.sqrt %112 : vector<4x512xf32>
    %cst_32 = arith.constant 6.28318548 : f32
    %114 = vector.broadcast %cst_32 : f32 to vector<4x512xf32>
    %115 = arith.mulf %114, %109 : vector<4x512xf32>
    %116 = math.cos %115 : vector<4x512xf32>
    %117 = arith.mulf %113, %116 : vector<4x512xf32>
    %c0_33 = arith.constant 0 : index
    %c0_34 = arith.constant 0 : index
    %118 = vector.load %arg2[%c0_33, %c0_34] : memref<4x512xf32, #tpu.memory_space<vmem>>, vector<4x512xf32>
    tpu.vector_store %arg2[%c0_33, %c0_34], %117 {strides = array<i32>} : memref<4x512xf32, #tpu.memory_space<vmem>>, vector<4x512xf32>,
    return
  }
  func.func @transform_0(%arg0: i32, %arg1: memref<1xi32, #tpu.memory_space<smem>>) -> (i32, i32) {
    %c0_i32 = arith.constant 0 : i32
    %c0_i32_0 = arith.constant 0 : i32
    return %arg0, %c0_i32 : i32, i32
  }
}

</mosaic_0001>

<bundles_post_ra>
// kernel: tpu_custom_call.1
= control target key start
LH: loop header
LB: loop body
LE: loop exit
PB: predicated region body
PF: predicated region fallthrough
CT: control target
= control target key end

     0   :  { %7 = vsyncpa [#allocation5], 0  ;;  %v10_v0 = vlaneseq  ;;  %s1244_s0 = inlined_call_operand.<no memory space> [shape: s32[1], index: 0, kind: input, shape index: {}]   ;;  %s1245_s1 = inlined_call_operand.hbm [shape: f32[4,512], index: 1, kind: output, shape index: {}]  }
   0x1   :  { %v20_v2 = vstv %s1244_s0  ;;  %s849_s0 = smov [#allocation4]  }
   0x2   :  { %v11_v1 = vshrl.u32 %v10_v0, 7  ;;  %v15_v7 = vand.u32 127, %v10_v0  ;;  %s693_s8 = sshll.u32 %s849_s0, 4  ;;  %s694_s8 = int_to_ptr.vmem [resolvable:$true] %s693_s8 }
   0x3   :  { %s819_s9 = scalar_lea.vmem %s694_s8, 256  ;;  %p824_p1 = scmp.lt.s32.totalorder %s694_s8, %s694_s8 }
   0x4   :  { %v19_v3 = vmul.u32 2654435769, %v11_v1  ;;  %v16_v10 = vadd.s32 128, %v15_v7  ;;  %v17_v11 = vadd.s32 256, %v15_v7  ;;  %v18_v12 = vadd.s32 384, %v15_v7  ;;  %p820_p0 = scmp.ne.s32.totalorder %s694_s8, %s819_s9  ;;  %p825_p2 = scmp.lt.s32.totalorder %s819_s9, %s819_s9 }
   0x5   :  { %v33_v15 = vmul.u32 2246822507, %v15_v7 }
   0x6   :  { %v21_v4 = vadd.s32 %v20_v2, %v19_v3  ;;  %v34_v16 = vmul.u32 2246822507, %v16_v10  ;;  %v35_v18 = vmul.u32 2246822507, %v17_v11  ;;  %p826_p3 = por %p825_p2, %p824_p1 }
   0x7   :  { %v36_v19 = vmul.u32 2246822507, %v18_v12 }
   0x8   :  { %v701_v5 = vshrl.u32 %v21_v4, 16  ;;  %p827_p4 = pnand %p826_p3, %p820_p0 }
   0xa   :  { %v24_v6 = vxor.u32 %v701_v5, %v21_v4 }
   0xc   :  { %v25_v8 = vmul.u32 2246822507, %v24_v6 }
   0xe   :  { %v702_v9 = vshrl.u32 %v25_v8, 13 }
  0x10   :  { %v28_v13 = vxor.u32 %v702_v9, %v25_v8 }
  0x12   :  { %v29_v14 = vmul.u32 3266489909, %v28_v13 }
  0x14   :  { %v703_v17 = vshrl.u32 %v29_v14, 16 }
  0x16   :  { %v32_v20 = vxor.u32 %v703_v17, %v29_v14 }
  0x18   :  { %v37_v21 = vxor.u32 %v33_v15, %v32_v20  ;;  %v38_v22 = vxor.u32 %v34_v16, %v32_v20  ;;  %v39_v23 = vxor.u32 %v35_v18, %v32_v20  ;;  %v40_v24 = vxor.u32 %v36_v19, %v32_v20 }
  0x1a   :  { %v704_v25 = vshrl.u32 %v37_v21, 16  ;;  %v705_v26 = vshrl.u32 %v38_v22, 16  ;;  %v706_v27 = vshrl.u32 %v39_v23, 16  ;;  %v707_v28 = vshrl.u32 %v40_v24, 16 }
  0x1c   :  { %v49_v29 = vxor.u32 %v704_v25, %v37_v21  ;;  %v50_v30 = vxor.u32 %v705_v26, %v38_v22  ;;  %v51_v31 = vxor.u32 %v706_v27, %v39_v23  ;;  %v52_v32 = vxor.u32 %v707_v28, %v40_v24 }
  0x1e   :  { %v53_v33 = vmul.u32 2246822507, %v49_v29  ;;  %v54_v34 = vmul.u32 2246822507, %v50_v30 }
  0x1f   :  { %v55_v35 = vmul.u32 2246822507, %v51_v31  ;;  %v56_v36 = vmul.u32 2246822507, %v52_v32 }
  0x20   :  { %v708_v37 = vshrl.u32 %v53_v33, 13  ;;  %v709_v38 = vshrl.u32 %v54_v34, 13 }
  0x21   :  { %v710_v39 = vshrl.u32 %v55_v35, 13  ;;  %v711_v40 = vshrl.u32 %v56_v36, 13 }
  0x22   :  { %v65_v41 = vxor.u32 %v708_v37, %v53_v33  ;;  %v66_v42 = vxor.u32 %v709_v38, %v54_v34 }
  0x23   :  { %v67_v43 = vxor.u32 %v710_v39, %v55_v35  ;;  %v68_v44 = vxor.u32 %v711_v40, %v56_v36 }
  0x24   :  { %v69_v45 = vmul.u32 3266489909, %v65_v41  ;;  %v70_v46 = vmul.u32 3266489909, %v66_v42 }
  0x25   :  { %v71_v47 = vmul.u32 3266489909, %v67_v43  ;;  %v72_v48 = vmul.u32 3266489909, %v68_v44 }
  0x26   :  { %v712_v49 = vshrl.u32 %v69_v45, 16  ;;  %v713_v50 = vshrl.u32 %v70_v46, 16 }
  0x27   :  { %v714_v51 = vshrl.u32 %v71_v47, 16  ;;  %v715_v52 = vshrl.u32 %v72_v48, 16 }
  0x28   :  { %v81_v53 = vxor.u32 %v712_v49, %v69_v45  ;;  %v82_v54 = vxor.u32 %v713_v50, %v70_v46 }
  0x29   :  { %v83_v55 = vxor.u32 %v714_v51, %v71_v47  ;;  %v84_v56 = vxor.u32 %v715_v52, %v72_v48 }
  0x2a   :  { %v85_v57 = vxor.u32 1540483477, %v81_v53  ;;  %v86_v58 = vxor.u32 1540483477, %v82_v54  ;;  %v133_v59 = vxor.u32 668265263, %v81_v53 }
  0x2b   :  { %v134_v60 = vxor.u32 668265263, %v82_v54  ;;  %v135_v63 = vxor.u32 668265263, %v83_v55  ;;  %v136_v0 = vxor.u32 668265263, %v84_v56 }
  0x2c   :  { %v716_v61 = vshrl.u32 %v85_v57, 16  ;;  %v717_v62 = vshrl.u32 %v86_v58, 16  ;;  %v728_v1 = vshrl.u32 %v133_v59, 16  ;;  %v87_v24 = vxor.u32 1540483477, %v83_v55 }
  0x2d   :  { %v729_v2 = vshrl.u32 %v134_v60, 16  ;;  %v730_v5 = vshrl.u32 %v135_v63, 16  ;;  %v731_v11 = vshrl.u32 %v136_v0, 16  ;;  %v88_v33 = vxor.u32 1540483477, %v84_v56 }
  0x2e   :  { %v97_v3 = vxor.u32 %v716_v61, %v85_v57  ;;  %v98_v4 = vxor.u32 %v717_v62, %v86_v58  ;;  %v145_v6 = vxor.u32 %v728_v1, %v133_v59  ;;  %v718_v34 = vshrl.u32 %v87_v24, 16 }
  0x2f   :  { %v146_v7 = vxor.u32 %v729_v2, %v134_v60  ;;  %v147_v8 = vxor.u32 %v730_v5, %v135_v63  ;;  %v148_v19 = vxor.u32 %v731_v11, %v136_v0  ;;  %v719_v43 = vshrl.u32 %v88_v33, 16 }
  0x30   :  { %v101_v9 = vmul.u32 2246822507, %v97_v3  ;;  %v102_v10 = vmul.u32 2246822507, %v98_v4  ;;  %v99_v44 = vxor.u32 %v718_v34, %v87_v24  ;;  %v843_v34 = vmov 683565275  }
  0x31   :  { %v149_v12 = vmul.u32 2246822507, %v145_v6  ;;  %v150_v13 = vmul.u32 2246822507, %v146_v7  ;;  %v100_v53 = vxor.u32 %v719_v43, %v88_v33 }
  0x32   :  { %v151_v14 = vmul.u32 2246822507, %v147_v8  ;;  %v720_v17 = vshrl.u32 %v101_v9, 13  ;;  %v721_v18 = vshrl.u32 %v102_v10, 13  ;;  %v152_v29 = vmul.u32 2246822507, %v148_v19 }
  0x33   :  { %v732_v15 = vshrl.u32 %v149_v12, 13  ;;  %v733_v16 = vshrl.u32 %v150_v13, 13  ;;  %v103_v54 = vmul.u32 2246822507, %v99_v44  ;;  %v104_v62 = vmul.u32 2246822507, %v100_v53 }
  0x34   :  { %v734_v20 = vshrl.u32 %v151_v14, 13  ;;  %v113_v27 = vxor.u32 %v720_v17, %v101_v9  ;;  %v114_v28 = vxor.u32 %v721_v18, %v102_v10  ;;  %v735_v39 = vshrl.u32 %v152_v29, 13 }
  0x35   :  { %v161_v21 = vxor.u32 %v732_v15, %v149_v12  ;;  %v162_v22 = vxor.u32 %v733_v16, %v150_v13  ;;  %v722_v63 = vshrl.u32 %v103_v54, 13  ;;  %v723_v8 = vshrl.u32 %v104_v62, 13 }
  0x36   :  { %v163_v23 = vxor.u32 %v734_v20, %v151_v14  ;;  %v117_v37 = vmul.u32 3266489909, %v113_v27  ;;  %v118_v38 = vmul.u32 3266489909, %v114_v28  ;;  %v164_v49 = vxor.u32 %v735_v39, %v152_v29 }
  0x37   :  { %v165_v25 = vmul.u32 3266489909, %v161_v21  ;;  %v166_v26 = vmul.u32 3266489909, %v162_v22  ;;  %v869_v9 = vxor.u32 %v722_v63, %v103_v54  ;;  %v872_v18 = vxor.u32 %v723_v8, %v104_v62 }
  0x38   :  { %v167_v32 = vmul.u32 3266489909, %v163_v23  ;;  %v724_v47 = vshrl.u32 %v117_v37, 16  ;;  %v725_v48 = vshrl.u32 %v118_v38, 16  ;;  %v168_v59 = vmul.u32 3266489909, %v164_v49 }
  0x39   :  { %v736_v30 = vshrl.u32 %v165_v25, 16  ;;  %v737_v31 = vshrl.u32 %v166_v26, 16  ;;  %v119_v19 = vmul.u32 3266489909, %v869_v9  ;;  %v120_v29 = vmul.u32 3266489909, %v872_v18 }
  0x3a   :  { %v738_v42 = vshrl.u32 %v167_v32, 16  ;;  %v129_v57 = vxor.u32 %v724_v47, %v117_v37  ;;  %v130_v58 = vxor.u32 %v725_v48, %v118_v38  ;;  %v739_v2 = vshrl.u32 %v168_v59, 16 }
  0x3b   :  { %v177_v35 = vxor.u32 %v736_v30, %v165_v25  ;;  %v178_v36 = vxor.u32 %v737_v31, %v166_v26  ;;  %v726_v30 = vshrl.u32 %v119_v19, 16  ;;  %v846_v48 = vmov 2102212464  }
  0x3c   :  { %v179_v52 = vxor.u32 %v738_v42, %v167_v32  ;;  %v740_v3 = vshrl.u32 %v129_v57, 8  ;;  %v741_v4 = vshrl.u32 %v130_v58, 8  ;;  %v180_v11 = vxor.u32 %v739_v2, %v168_v59 }
  0x3d   :  { %v744_v40 = vshrl.u32 %v177_v35, 8  ;;  %v745_v41 = vshrl.u32 %v178_v36, 8  ;;  %v848_v59 = vmov 1326507024  }
  0x3e   :  { %v746_v61 = vshrl.u32 %v179_v52, 8  ;;  %v189_v12 = vcvt.s32.f32 %v740_v3  ;;  %v190_v13 = vcvt.s32.f32 %v741_v4  ;;  %v747_v23 = vshrl.u32 %v180_v11, 8 }
  0x3f   :  { %v209_v45 = vcvt.s32.f32 %v744_v40  ;;  %v210_v46 = vcvt.s32.f32 %v745_v41  ;;  %v844_v41 = vmov 2475754826   ;;  %v847_v52 = vmov 920167782  }
  0x40   :  { %v211_v6 = vcvt.s32.f32 %v746_v61  ;;  %v875_v21 = vmul.f32 5.9604645e-08, %v189_v12  ;;  %v877_v22 = vmul.f32 5.9604645e-08, %v190_v13  ;;  %v212_v33 = vcvt.s32.f32 %v747_v23 }
  0x41   :  { %v213_v50 = vmul.f32 5.9604645e-08, %v209_v45  ;;  %v214_v51 = vmul.f32 5.9604645e-08, %v210_v46  ;;  %v845_v45 = vmov 2131351028   ;;  %v909_v11 = vshrl.u32 %v120_v29, 16 }
  0x42   :  { %v215_v15 = vmul.f32 5.9604645e-08, %v211_v6  ;;  %v197_v31 = vsub.f32 1.0, %v875_v21  ;;  %v198_v32 = vsub.f32 1.0, %v877_v22  ;;  %v916_v22 = vxor.u32 %v726_v30, %v119_v19 }
  0x43   :  { %v863_v55 = vmul.f32 6.2831855, %v213_v50  ;;  %v865_v56 = vmul.f32 6.2831855, %v214_v51  ;;  %v216_v23 = vmul.f32 5.9604645e-08, %v212_v33 }
  0x44   :  { %v882_v26 = vmul.f32 6.2831855, %v215_v15  ;;  %787 = vlog2.f32 %v197_v31 }
  0x45   :  { %v264_v60 = vand.u32 2139095040, %v863_v55  ;;  %v367_v1 = vand.u32 2139095040, %v865_v56  ;;  %v261_v14 = vand.u32 2147483647, %v863_v55  ;;  %v364_v25 = vand.u32 2147483647, %v865_v56 }
  0x46   :  { %v467_v39 = vand.u32 2147483647, %v882_v26  ;;  %v470_v43 = vand.u32 2139095040, %v882_v26  ;;  %789 = vlog2.f32 %v198_v32 }
  0x47   :  { %v265_v0 = vshrl.u32 %v264_v60, 23  ;;  %v368_v7 = vshrl.u32 %v367_v1, 23  ;;  %v268_v24 = vand.u32 8388607, %v261_v14  ;;  %v371_v38 = vand.u32 8388607, %v364_v25 }
  0x48   :  { %v471_v62 = vshrl.u32 %v470_v43, 23 }
  0x49   :  { %v748_v5 = vadd.s32 4294967169, %v265_v0  ;;  %v752_v17 = vadd.s32 4294967169, %v368_v7  ;;  %v269_v36 = vor.u32 8388608, %v268_v24  ;;  %v372_v13 = vor.u32 8388608, %v371_v38 }
  0x4a   :  { %v756_v15 = vadd.s32 4294967169, %v471_v62 }
  0x4b   :  { %v271_v10 = vadd.s32 1, %v748_v5  ;;  %v374_v28 = vadd.s32 1, %v752_v17  ;;  %v309_v1 = vshll.u32 %v269_v36, 8 }
  0x4c   :  { %v477_v9 = vadd.s32 1, %v756_v15 }
  0x4d   :  { %vm272_vm0 = vcmp.gt.s32.totalorder %v271_v10, 0  ;;  %vm375_vm1 = vcmp.gt.s32.totalorder %v374_v28, 0 }
  0x4e   :  { %v273_v16 = vsel %vm272_vm0, %v271_v10, 0  ;;  %v376_v2 = vsel %vm375_vm1, %v374_v28, 0  ;;  %vm478_vm11 = vcmp.gt.s32.totalorder %v477_v9, 0 }
  0x4f   :  { %v275_v20 = vand.u32 31, %v273_v16  ;;  %v274_v37 = vshrl.u32 %v273_v16, 5  ;;  %v378_v21 = vand.u32 31, %v376_v2 }
  0x51   :  { %v276_v27 = vsub.s32 32, %v275_v20  ;;  %v278_v35 = vshll.u32 %v843_v34, %v275_v20  ;;  %v281_v44 = vshll.u32 %v844_v41, %v275_v20  ;;  %v284_v47 = vshll.u32 %v845_v45, %v275_v20 }
  0x52   :  { %v287_v51 = vshll.u32 %v846_v48, %v275_v20  ;;  %v290_v54 = vshll.u32 %v847_v52, %v275_v20  ;;  %vm293_vm2 = vcmp.lt.s32.totalorder %v274_v37, 1  ;;  %vm295_vm3 = vcmp.lt.s32.totalorder %v274_v37, 3 }
  0x53   :  { %v277_v40 = vshrl.u32 %v843_v34, %v276_v27  ;;  %v279_v42 = vshrl.u32 %v844_v41, %v276_v27  ;;  %v282_v46 = vshrl.u32 %v845_v45, %v276_v27  ;;  %v285_v49 = vshrl.u32 %v846_v48, %v276_v27 }
  0x54   :  { %v288_v53 = vshrl.u32 %v847_v52, %v276_v27  ;;  %v291_v60 = vshrl.u32 %v848_v59, %v276_v27  ;;  %vm296_vm4 = vcmp.lt.s32.totalorder %v274_v37, 4  ;;  %vm294_vm5 = vcmp.lt.s32.totalorder %v274_v37, 2 }
  0x55   :  { %v280_v50 = vor.u32 %v279_v42, %v278_v35  ;;  %v283_v57 = vor.u32 %v282_v46, %v281_v44  ;;  %v286_v58 = vor.u32 %v285_v49, %v284_v47  ;;  %v377_v20 = vshrl.u32 %v376_v2, 5 }
  0x56   :  { %v289_v61 = vor.u32 %v288_v53, %v287_v51  ;;  %v292_v63 = vor.u32 %v291_v60, %v290_v54  ;;  %v924_v35 = vand.u32 8388607, %v467_v39  ;;  %v379_v30 = vsub.s32 32, %v378_v21 }
  0x57   :  { %v298_v0 = vsel %vm296_vm4, %v286_v58, 2102212464  ;;  %v301_v3 = vsel %vm293_vm2, %v280_v50, %v283_v57  ;;  %v305_v5 = vsel %vm293_vm2, %v283_v57, %v286_v58  ;;  %v297_v6 = vsel %vm293_vm2, %v277_v40, %v280_v50 }
  0x58   :  { %v302_v4 = vsel %vm296_vm4, %v289_v61, 920167782  ;;  %v299_v7 = vsel %vm295_vm3, %v283_v57, %v298_v0  ;;  %v306_v10 = vsel %vm296_vm4, %v292_v63, 1326507024  ;;  %v930_v40 = vshll.u32 %v372_v13, 8  ;;  %v788_v0 = vpop.eup %787 }
  0x59   :  { %v303_v8 = vsel %vm295_vm3, %v286_v58, %v302_v4  ;;  %v307_v12 = vsel %vm295_vm3, %v289_v61, %v306_v10  ;;  %v300_v24 = vsel %vm294_vm5, %v297_v6, %v299_v7  ;;  %v381_v31 = vshll.u32 %v843_v34, %v378_v21 }
  0x5a   :  { %v304_v16 = vsel %vm294_vm5, %v301_v3, %v303_v8  ;;  %v308_v17 = vsel %vm294_vm5, %v305_v5, %v307_v12  ;;  %v316_v19 = vmul.u32 %v309_v1, %v300_v24  ;;  %vm396_vm6 = vcmp.lt.s32.totalorder %v377_v20, 1  ;;  %v790_v5 = vpop.eup %789 }
  0x5b   :  { %v919_v27 = vmul.u32.u64.low %v309_v1, %v308_v17  ;;  %v920_v28 = vmul.u32.u64.high %v309_v1, %v308_v17, %v919_v27  ;;  %v926_v36 = vmul.u32.u64.low %v309_v1, %v304_v16  ;;  %v927_v38 = vmul.u32.u64.high %v309_v1, %v304_v16, %v926_v36 }
  0x5c   :  { %v384_v32 = vshll.u32 %v844_v41, %v378_v21  ;;  %v387_v33 = vshll.u32 %v845_v45, %v378_v21  ;;  %v390_v37 = vshll.u32 %v846_v48, %v378_v21  ;;  %v393_v42 = vshll.u32 %v847_v52, %v378_v21 }
  0x5d   :  { %vm318_vm7 = vc.u32 %v920_v28, %v926_v36  ;;  %v380_v43 = vshrl.u32 %v843_v34, %v379_v30  ;;  %v382_v44 = vshrl.u32 %v844_v41, %v379_v30  ;;  %vm397_vm8 = vcmp.lt.s32.totalorder %v377_v20, 2 }
  0x5e   :  { %v319_v46 = vadd.s32 1, %v927_v38  ;;  %v385_v47 = vshrl.u32 %v845_v45, %v379_v30  ;;  %v388_v49 = vshrl.u32 %v846_v48, %v379_v30  ;;  %v391_v50 = vshrl.u32 %v847_v52, %v379_v30 }
  0x5f   :  { %v383_v51 = vor.u32 %v382_v44, %v381_v31  ;;  %v394_v53 = vshrl.u32 %v848_v59, %v379_v30  ;;  %vm398_vm9 = vcmp.lt.s32.totalorder %v377_v20, 3  ;;  %vm399_vm10 = vcmp.lt.s32.totalorder %v377_v20, 4 }
  0x60   :  { %v320_v54 = vsel %vm318_vm7, %v319_v46, %v927_v38  ;;  %v386_v57 = vor.u32 %v385_v47, %v384_v32  ;;  %v389_v58 = vor.u32 %v388_v49, %v387_v33  ;;  %v392_v60 = vor.u32 %v391_v50, %v390_v37 }
  0x61   :  { %v321_v61 = vadd.s32 %v320_v54, %v316_v19  ;;  %v395_v62 = vor.u32 %v394_v53, %v393_v42  ;;  %v400_v63 = vsel %vm396_vm6, %v380_v43, %v383_v51  ;;  %v479_v16 = vsel %vm478_vm11, %v477_v9, 0 }
  0x62   :  { %v401_v1 = vsel %vm399_vm10, %v389_v58, 2102212464  ;;  %v404_v2 = vsel %vm396_vm6, %v383_v51, %v386_v57  ;;  %v405_v3 = vsel %vm399_vm10, %v392_v60, 920167782  ;;  %v408_v4 = vsel %vm396_vm6, %v386_v57, %v389_v58 }
  0x63   :  { %v322_v6 = vadd.s32 536870912, %v321_v61  ;;  %v402_v7 = vsel %vm398_vm9, %v386_v57, %v401_v1  ;;  %v406_v8 = vsel %vm398_vm9, %v389_v58, %v405_v3  ;;  %v409_v10 = vsel %vm399_vm10, %v395_v62, 1326507024 }
  0x64   :  { %v403_v12 = vsel %vm397_vm8, %v400_v63, %v402_v7  ;;  %v407_v13 = vsel %vm397_vm8, %v404_v2, %v406_v8  ;;  %v410_v15 = vsel %vm398_vm9, %v392_v60, %v409_v10  ;;  %v969_v38 = vxor.u32 %v909_v11, %v120_v29 }
  0x65   :  { %v958_v17 = vshrl.u32 %v322_v6, 30  ;;  %v411_v21 = vsel %vm397_vm8, %v408_v4, %v410_v15  ;;  %v962_v24 = vmul.u32.u64.low %v930_v40, %v407_v13  ;;  %v963_v27 = vmul.u32.u64.high %v930_v40, %v407_v13, %v962_v24 }
  0x66   :  { %v742_v19 = vshrl.u32 %v916_v22, 8  ;;  %v973_v30 = vmul.u32.u64.low %v930_v40, %v411_v21  ;;  %v974_v31 = vmul.u32.u64.high %v930_v40, %v411_v21, %v973_v30  ;;  %v976_v9 = vmul.f32 6.2831855, %v216_v23 }
  0x67   :  { %v324_v20 = vshll.u32 %v958_v17, 30  ;;  %v475_v32 = vor.u32 8388608, %v924_v35  ;;  %v481_v33 = vand.u32 31, %v479_v16  ;;  %v218_v37 = vmul.f32 0.6931472, %v788_v0 }
  0x68   :  { %v220_v42 = vmul.f32 0.6931472, %v790_v5  ;;  %v419_v18 = vmul.u32 %v930_v40, %v403_v12  ;;  %v422_v29 = vadd.s32 1, %v963_v27  ;;  %v984_v11 = vshrl.u32 %v479_v16, 5 }
  0x69   :  { %v981_v43 = vsub.s32 %v321_v61, %v324_v20  ;;  %v482_v22 = vsub.s32 32, %v481_v33  ;;  %v743_v44 = vshrl.u32 %v969_v38, 8  ;;  %v987_v23 = vcvt.s32.f32 %v742_v19 }
  0x6a   :  { %vm421_vm12 = vc.u32 %v974_v31, %v962_v24  ;;  %v484_v35 = vshll.u32 %v843_v34, %v481_v33  ;;  %v994_v47 = vshll.u32 %v475_v32, 8  ;;  %v573_v49 = vand.u32 2139095040, %v976_v9 }
  0x6b   :  { %v327_v46 = vsub.s32 0, %v981_v43  ;;  %v423_v40 = vsel %vm421_vm12, %v422_v29, %v963_v27  ;;  %v485_v51 = vshrl.u32 %v844_v41, %v482_v22  ;;  %v487_v53 = vshll.u32 %v844_v41, %v481_v33 }
  0x6c   :  { %v424_v50 = vadd.s32 %v423_v40, %v419_v18  ;;  %v488_v54 = vshrl.u32 %v845_v45, %v482_v22  ;;  %v1000_v57 = vmul.f32 -2.0, %v218_v37  ;;  %v1002_v58 = vmul.f32 -2.0, %v220_v42 }
  0x6d   :  { %v749_v60 = vmin.u32 %v327_v46, %v981_v43  ;;  %vm499_vm13 = vcmp.lt.s32.totalorder %v984_v11, 1  ;;  %v486_v62 = vor.u32 %v485_v51, %v484_v35  ;;  %v490_v63 = vshll.u32 %v845_v45, %v481_v33 }
  0x6e   :  { %v425_v61 = vadd.s32 536870912, %v424_v50  ;;  %vm502_vm14 = vcmp.lt.s32.totalorder %v984_v11, 4  ;;  %v491_v1 = vshrl.u32 %v846_v48, %v482_v22  ;;  %v493_v2 = vshll.u32 %v846_v48, %v481_v33 }
  0x6f   :  { %v329_v0 = vclz %v749_v60  ;;  %v494_v3 = vshrl.u32 %v847_v52, %v482_v22  ;;  %v489_v5 = vor.u32 %v488_v54, %v487_v53  ;;  %v496_v6 = vshll.u32 %v847_v52, %v481_v33 }
  0x70   :  { %v1011_v4 = vshrl.u32 %v425_v61, 30  ;;  %v497_v7 = vshrl.u32 %v848_v59, %v482_v22  ;;  %v483_v10 = vshrl.u32 %v843_v34, %v482_v22  ;;  %v492_v12 = vor.u32 %v491_v1, %v490_v63 }
  0x71   :  { %v750_v8 = vadd.s32 4294967294, %v329_v0  ;;  %v495_v13 = vor.u32 %v494_v3, %v493_v2  ;;  %791 = vrsqrt.f32 %v1000_v57  ;;  %v317_v15 = vadd.s32 %v926_v36, %v920_v28 }
  0x72   :  { %v427_v16 = vshll.u32 %v1011_v4, 30  ;;  %vm501_vm15 = vcmp.lt.s32.totalorder %v984_v11, 3  ;;  %v498_v21 = vor.u32 %v497_v7, %v496_v6  ;;  %v504_v27 = vsel %vm502_vm14, %v492_v12, 2102212464 }
  0x73   :  { %vm751_vm0 = vcmp.lt.s32.totalorder %v750_v8, 0  ;;  %v508_v19 = vsel %vm502_vm14, %v495_v13, 920167782  ;;  %vm500_vm1 = vcmp.lt.s32.totalorder %v984_v11, 2  ;;  %v507_v28 = vsel %vm499_vm13, %v486_v62, %v489_v5 }
  0x74   :  { %v332_v30 = vsel %vm751_vm0, 0, %v750_v8  ;;  %v1025_v20 = vsub.s32 %v424_v50, %v427_v16  ;;  %v503_v37 = vsel %vm499_vm13, %v483_v10, %v486_v62  ;;  %v505_v18 = vsel %vm501_vm15, %v489_v5, %v504_v27 }
  0x75   :  { %v333_v36 = vsub.s32 32, %v332_v30  ;;  %v334_v32 = vshll.u32 %v981_v43, %v332_v30  ;;  %v337_v33 = vsub.s32 4294967266, %v332_v30  ;;  %v509_v29 = vsel %vm501_vm15, %v492_v12, %v508_v19 }
  0x76   :  { %v430_v42 = vsub.s32 0, %v1025_v20  ;;  %v511_v22 = vsel %vm499_vm13, %v489_v5, %v492_v12  ;;  %v510_v43 = vsel %vm500_vm1, %v507_v28, %v509_v29  ;;  %v512_v40 = vsel %vm502_vm14, %v498_v21, 1326507024 }
  0x77   :  { %v335_v35 = vshrl.u32 %v317_v15, %v333_v36  ;;  %v338_v46 = vadd.s32 127, %v337_v33  ;;  %793 = vrsqrt.f32 %v1002_v58  ;;  %v347_v50 = vsub.s32 4, %v958_v17 }
  0x78   :  { %v753_v51 = vmin.u32 %v430_v42, %v1025_v20  ;;  %v574_v53 = vshrl.u32 %v573_v49, 23  ;;  %v506_v61 = vsel %vm500_vm1, %v503_v37, %v505_v18  ;;  %v513_v62 = vsel %vm501_vm15, %v495_v13, %v512_v40 }
  0x79   :  { %v336_v54 = vor.u32 %v335_v35, %v334_v32  ;;  %v339_v60 = vshll.u32 %v338_v46, 23  ;;  %v514_v0 = vsel %vm500_vm1, %v511_v22, %v513_v62  ;;  %v1064_v8 = vcvt.s32.f32 %v743_v44 }
  0x7a   :  { %v432_v63 = vclz %v753_v51  ;;  %v1054_v1 = vmul.u32.u64.low %v994_v47, %v510_v43  ;;  %v1055_v2 = vmul.u32.u64.high %v994_v47, %v510_v43, %v1054_v1  ;;  %vm263_vm2 = vcmp.lt.s32.totalorder %v863_v55, 0 }
  0x7b   :  { %v340_v3 = vor.u32 4788187, %v339_v60  ;;  %v343_v5 = vcvt.s32.f32 %v336_v54  ;;  %v1059_v49 = vmul.u32.u64.low %v994_v47, %v514_v0  ;;  %v1060_v6 = vmul.u32.u64.high %v994_v47, %v514_v0, %v1059_v49  ;;  %v792_v7 = vpop.eup %791 }
  0x7c   :  { %v754_v11 = vadd.s32 4294967294, %v432_v63  ;;  %v760_v10 = vadd.s32 4294967169, %v574_v53  ;;  %vm1069_vm3 = vcmp.le.f32.partialorder %v261_v14, 0.7853982  ;;  %v522_v15 = vmul.u32 %v994_v47, %v506_v61 }
  0x7d   :  { %v341_v13 = vand.u32 2147483647, %v340_v3  ;;  %v570_v16 = vand.u32 2147483647, %v976_v9  ;;  %v420_v38 = vadd.s32 %v962_v24, %v974_v31  ;;  %v525_v44 = vadd.s32 1, %v1055_v2 }
  0x7e   :  { %vm755_vm4 = vcmp.lt.s32.totalorder %v754_v11, 0  ;;  %v580_v21 = vadd.s32 1, %v760_v10  ;;  %v348_v14 = vsel %vm263_vm2, %v347_v50, %v958_v17  ;;  %vm524_vm5 = vc.u32 %v1060_v6, %v1054_v1 }
  0x7f   :  { %v344_v27 = vmul.f32 %v343_v5, %v341_v13  ;;  %v435_v19 = vsel %vm755_vm4, 0, %v754_v11  ;;  %v526_v36 = vsel %vm524_vm5, %v525_v44, %v1055_v2  ;;  %vm231_vm6 = vcmp.eq.f32.partialorder %v1000_v57, inf }
  0x80   :  { %v436_v30 = vsub.s32 32, %v435_v19  ;;  %v437_v47 = vshll.u32 %v1025_v20, %v435_v19  ;;  %v440_v28 = vsub.s32 4294967266, %v435_v19  ;;  %v527_v31 = vadd.s32 %v526_v36, %v522_v15 }
  0x81   :  { %v345_v24 = vxor.u32 2147483648, %v344_v27  ;;  %vm581_vm7 = vcmp.gt.s32.totalorder %v580_v21, 0  ;;  %v794_v32 = vpop.eup %793  ;;  %v230_v33 = vmul.f32 %v792_v7, %v1000_v57  ;;  %vm366_vm8 = vcmp.lt.s32.totalorder %v865_v56, 0 }
  0x82   :  { %v438_v17 = vshrl.u32 %v420_v38, %v436_v30  ;;  %v441_v37 = vadd.s32 127, %v440_v28  ;;  %v582_v42 = vsel %vm581_vm7, %v580_v21, 0  ;;  %v350_v20 = vsel %vm1069_vm3, 0, %v348_v14 }
  0x83   :  { %v346_v18 = vsel %vm263_vm2, %v345_v24, %v344_v27  ;;  %v528_v29 = vadd.s32 536870912, %v527_v31  ;;  %v584_v22 = vand.u32 31, %v582_v42  ;;  %v234_v35 = vand.u32 2147483648, %v1000_v57 }
  0x84   :  { %v349_v46 = vsel %vm1069_vm3, %v863_v55, %v346_v18  ;;  %vm1098_vm9 = vcmp.le.f32.partialorder %v364_v25, 0.7853982  ;;  %v439_v40 = vor.u32 %v438_v17, %v437_v47  ;;  %v442_v50 = vshll.u32 %v441_v37, 23 }
  0x85   :  { %v1103_v51 = vmul.f32 %v794_v32, %v1002_v58  ;;  %795 = vcosq.f32 %v349_v46  ;;  %v1105_v53 = vshrl.u32 %v528_v29, 30  ;;  %v585_v54 = vsub.s32 32, %v584_v22 }
  0x86   :  { %797 = vsinq.f32 %v349_v46  ;;  %v1107_v60 = vand.u32 3, %v350_v20  ;;  %v443_v61 = vor.u32 4788187, %v442_v50  ;;  %v446_v62 = vcvt.s32.f32 %v439_v40 }
  0x87   :  { %v1112_v25 = vsel %vm231_vm6, %v1000_v57, %v230_v33  ;;  %v450_v63 = vsub.s32 4, %v1011_v4  ;;  %v530_v0 = vshll.u32 %v1105_v53, 30  ;;  %v577_v2 = vand.u32 8388607, %v570_v16 }
  0x88   :  { %v444_v3 = vand.u32 2147483647, %v443_v61  ;;  %v587_v5 = vshll.u32 %v843_v34, %v584_v22  ;;  %v588_v49 = vshrl.u32 %v844_v41, %v585_v54  ;;  %v590_v7 = vshll.u32 %v844_v41, %v584_v22 }
  0x89   :  { %v1121_v11 = vsub.s32 %v527_v31, %v530_v0  ;;  %v591_v10 = vshrl.u32 %v845_v45, %v585_v54  ;;  %v593_v12 = vshll.u32 %v845_v45, %v584_v22  ;;  %v594_v13 = vshrl.u32 %v846_v48, %v585_v54 }
  0x8a   :  { %vm356_vm10 = vcmp.eq.s32.totalorder %v1107_v60, 0  ;;  %vm359_vm11 = vcmp.eq.s32.totalorder %v1107_v60, 2  ;;  %v447_v15 = vmul.f32 %v446_v62, %v444_v3  ;;  %v583_v38 = vshrl.u32 %v582_v42, 5 }
  0x8b   :  { %v596_v44 = vshll.u32 %v846_v48, %v584_v22  ;;  %v451_v41 = vsel %vm366_vm8, %v450_v63, %v1011_v4  ;;  %v533_v21 = vsub.s32 0, %v1121_v11  ;;  %v597_v27 = vshrl.u32 %v847_v52, %v585_v54 }
  0x8c   :  { %v599_v45 = vshll.u32 %v847_v52, %v584_v22  ;;  %v448_v14 = vxor.u32 2147483648, %v447_v15  ;;  %v578_v19 = vor.u32 8388608, %v577_v2  ;;  %v586_v30 = vshrl.u32 %v843_v34, %v585_v54 }
  0x8d   :  { %v600_v47 = vshrl.u32 %v848_v59, %v585_v54  ;;  %v757_v28 = vmin.u32 %v533_v21, %v1121_v11  ;;  %v589_v36 = vor.u32 %v588_v49, %v587_v5  ;;  %v592_v48 = vor.u32 %v591_v10, %v590_v7 }
  0x8e   :  { %v595_v24 = vor.u32 %v594_v13, %v593_v12  ;;  %vm233_vm12 = vcmp.eq.f32.partialorder %v1000_v57, 0.0  ;;  %vm238_vm13 = vcmp.eq.f32.partialorder %v1002_v58, inf  ;;  %v449_v4 = vsel %vm366_vm8, %v448_v14, %v447_v15 }
  0x8f   :  { %v598_v31 = vor.u32 %v597_v27, %v596_v44  ;;  %vm602_vm14 = vcmp.lt.s32.totalorder %v583_v38, 1  ;;  %vm603_vm15 = vcmp.lt.s32.totalorder %v583_v38, 2  ;;  %v796_v52 = vpop.eup %795  ;;  %v452_v34 = vsel %vm1098_vm9, %v865_v56, %v449_v4 }
  0x90   :  { %v535_v59 = vclz %v757_v28  ;;  %v601_v32 = vor.u32 %v600_v47, %v599_v45  ;;  %vm605_vm0 = vcmp.lt.s32.totalorder %v583_v38, 4  ;;  %v798_v33 = vpop.eup %797  ;;  %v360_v17 = vxor.u32 2147483648, %v796_v52 }
  0x91   :  { %799 = vcosq.f32 %v452_v34  ;;  %vm604_vm1 = vcmp.lt.s32.totalorder %v583_v38, 3  ;;  %v607_v37 = vsel %vm605_vm0, %v595_v24, 2102212464  ;;  %v357_v42 = vxor.u32 2147483648, %v798_v33 }
  0x92   :  { %801 = vsinq.f32 %v452_v34  ;;  %v758_v18 = vadd.s32 4294967294, %v535_v59  ;;  %v610_v20 = vsel %vm602_vm14, %v589_v36, %v592_v48  ;;  %v453_v29 = vsel %vm1098_vm9, 0, %v451_v41 }
  0x93   :  { %v606_v22 = vsel %vm602_vm14, %v586_v30, %v589_v36  ;;  %v611_v46 = vsel %vm605_vm0, %v598_v31, 920167782  ;;  %v618_v40 = vshll.u32 %v578_v19, 8  ;;  %v614_v54 = vsel %vm602_vm14, %v592_v48, %v595_v24 }
  0x94   :  { %vm759_vm2 = vcmp.lt.s32.totalorder %v758_v18, 0  ;;  %v612_v50 = vsel %vm604_vm1, %v595_v24, %v611_v46  ;;  %v615_v61 = vsel %vm605_vm0, %v601_v32, 1326507024  ;;  %v608_v63 = vsel %vm604_vm1, %v592_v48, %v607_v37 }
  0x95   :  { %v538_v62 = vsel %vm759_vm2, 0, %v758_v18  ;;  %v613_v0 = vsel %vm603_vm15, %v610_v20, %v612_v50  ;;  %v616_v43 = vsel %vm604_vm1, %v598_v31, %v615_v61  ;;  %vm355_vm3 = vcmp.lt.s32.totalorder %v1107_v60, 2 }
  0x96   :  { %v358_v2 = vsel %vm356_vm10, %v796_v52, %v357_v42  ;;  %v361_v3 = vsel %vm359_vm11, %v360_v17, %v798_v33  ;;  %v543_v5 = vsub.s32 4294967266, %v538_v62  ;;  %v457_v49 = vand.u32 3, %v453_v29 }
  0x97   :  { %v617_v7 = vsel %vm603_vm15, %v614_v54, %v616_v43  ;;  %v1163_v10 = vmul.u32.u64.low %v618_v40, %v613_v0  ;;  %v1164_v12 = vmul.u32.u64.high %v618_v40, %v613_v0, %v1163_v10  ;;  %vm353_vm4 = vweird.f32 %v863_v55 }
  0x98   :  { %v609_v13 = vsel %vm603_vm15, %v606_v22, %v608_v63  ;;  %v1169_v15 = vmul.u32.u64.low %v618_v40, %v617_v7  ;;  %v1170_v44 = vmul.u32.u64.high %v618_v40, %v617_v7, %v1169_v15  ;;  %v362_v41 = vsel %vm355_vm3, %v358_v2, %v361_v3 }
  0x99   :  { %v523_v60 = vadd.s32 %v1054_v1, %v1060_v6  ;;  %v539_v21 = vsub.s32 32, %v538_v62  ;;  %v544_v27 = vadd.s32 127, %v543_v5  ;;  %v235_v45 = vsel %vm233_vm12, %v234_v35, %v1112_v25 }
  0x9a   :  { %v239_v38 = vsel %vm238_vm13, %v1002_v58, %v1103_v51  ;;  %vm240_vm5 = vcmp.eq.f32.partialorder %v1002_v58, 0.0  ;;  %v241_v14 = vand.u32 2147483648, %v1002_v58  ;;  %vm458_vm6 = vcmp.lt.s32.totalorder %v457_v49, 2 }
  0x9b   :  { %v800_v19 = vpop.eup %799  ;;  %vm462_vm7 = vcmp.eq.s32.totalorder %v457_v49, 2  ;;  %v625_v1 = vmul.u32 %v618_v40, %v609_v13  ;;  %v628_v6 = vadd.s32 1, %v1164_v12  ;;  %v363_v57 = vsel %vm353_vm4, nan, %v362_v41 }
  0x9c   :  { %v802_v30 = vpop.eup %801  ;;  %vm459_vm8 = vcmp.eq.s32.totalorder %v457_v49, 0  ;;  %v463_v35 = vxor.u32 2147483648, %v800_v19  ;;  %v540_v25 = vshll.u32 %v1121_v11, %v538_v62  ;;  %v541_v51 = vshrl.u32 %v523_v60, %v539_v21 }
  0x9d   :  { %v460_v47 = vxor.u32 2147483648, %v802_v30  ;;  %v545_v28 = vshll.u32 %v544_v27, 23  ;;  %vm627_vm9 = vc.u32 %v1170_v44, %v1163_v10  ;;  %v195_v36 = vmul.f32 5.9604645e-08, %v987_v23 }
  0x9e   :  { %vm456_vm10 = vweird.f32 %v865_v56  ;;  %v464_v48 = vsel %vm462_vm7, %v463_v35, %v802_v30  ;;  %v629_v24 = vsel %vm627_vm9, %v628_v6, %v1164_v12  ;;  %v242_v55 = vsel %vm240_vm5, %v241_v14, %v239_v38 }
  0x9f   :  { %v461_v4 = vsel %vm459_vm8, %v800_v19, %v460_v47  ;;  %v630_v31 = vadd.s32 %v629_v24, %v625_v1  ;;  %v196_v11 = vmul.f32 5.9604645e-08, %v1064_v8  ;;  %v673_v34 = vmul.f32 %v363_v57, %v235_v45 }
  0xa0   :  { %v465_v52 = vsel %vm458_vm6, %v461_v4, %v464_v48  ;;  %v542_v32 = vor.u32 %v541_v51, %v540_v25  ;;  %v546_v33 = vor.u32 4788187, %v545_v28  ;;  %v199_v23 = vsub.f32 1.0, %v195_v36 }
  0xa1   :  { %v466_v59 = vsel %vm456_vm10, nan, %v465_v52  ;;  %v631_v17 = vadd.s32 536870912, %v630_v31  ;;  %v200_v42 = vsub.f32 1.0, %v196_v11  ;;  %vm469_vm11 = vcmp.lt.s32.totalorder %v882_v26, 0 }
  0xa2   :  { %v674_v37 = vmul.f32 %v466_v59, %v242_v55  ;;  %v547_v20 = vand.u32 2147483647, %v546_v33  ;;  %v549_v29 = vcvt.s32.f32 %v542_v32  ;;  %803 = vlog2.f32 %v199_v23 }
  0xa3   :  { %v632_v56 = vshrl.u32 %v631_v17, 30  ;;  %805 = vlog2.f32 %v200_v42  ;;  %vm1201_vm12 = vcmp.le.f32.partialorder %v467_v39, 0.7853982  ;;  %v626_v43 = vadd.s32 %v1163_v10, %v1170_v44 }
  0xa4   :  { %v681_v18 = vcombine.low %v673_v34, %v674_v37  ;;  %v550_v8 = vmul.f32 %v549_v29, %v547_v20  ;;  %v553_v10 = vsub.s32 4, %v1105_v53  ;;  %vm572_vm14 = vcmp.lt.s32.totalorder %v976_v9, 0 }
  0xa5   :  { %v633_v58 = vshll.u32 %v632_v56, 30  ;;  %vm1221_vm15 = vcmp.le.f32.partialorder %v570_v16, 0.7853982  ;;  %v656_v35 = vsub.s32 4, %v632_v56  ;;  %vm559_vm6 = vweird.f32 %v882_v26 }
  0xa6   :  { %685 = vst [vmem:[#allocation4] sm:$0xff] %v681_v18  ;;  %v551_v50 = vxor.u32 2147483648, %v550_v8  ;;  %v554_v19 = vsel %vm469_vm11, %v553_v10, %v1105_v53 }
  0xa7   :  { %v634_v22 = vsub.s32 %v630_v31, %v633_v58  ;;  %v556_v6 = vsel %vm1201_vm12, 0, %v554_v19  ;;  %v657_v36 = vsel %vm572_vm14, %v656_v35, %v632_v56 }
  0xa8   :  { %v552_v0 = vsel %vm469_vm11, %v551_v50, %v550_v8  ;;  %v560_v28 = vand.u32 3, %v556_v6  ;;  %v659_v16 = vsel %vm1221_vm15, 0, %v657_v36  ;;  %vm662_vm11 = vweird.f32 %v976_v9 }
  0xa9   :  { %v636_v46 = vsub.s32 0, %v634_v22  ;;  %v555_v39 = vsel %vm1201_vm12, %v882_v26, %v552_v0  ;;  %v663_v34 = vand.u32 3, %v659_v16 }
  0xaa   :  { %807 = vcosq.f32 %v555_v39  ;;  %vm562_vm0 = vcmp.eq.s32.totalorder %v560_v28, 0  ;;  %vm565_vm1 = vcmp.eq.s32.totalorder %v560_v28, 2  ;;  %vm561_vm3 = vcmp.lt.s32.totalorder %v560_v28, 2 }
  0xab   :  { %v761_v40 = vmin.u32 %v636_v46, %v634_v22  ;;  %809 = vsinq.f32 %v555_v39  ;;  %vm668_vm7 = vcmp.eq.s32.totalorder %v663_v34, 2  ;;  %vm665_vm9 = vcmp.eq.s32.totalorder %v663_v34, 0 }
  0xac   :  { %v804_v62 = vpop.eup %803  ;;  %vm664_vm10 = vcmp.lt.s32.totalorder %v663_v34, 2 }
  0xad   :  { %v638_v54 = vclz %v761_v40  ;;  %v806_v2 = vpop.eup %805  ;;  %v222_v5 = vmul.f32 0.6931472, %v804_v62 }
  0xae   :  { %v224_v13 = vmul.f32 0.6931472, %v806_v2 }
  0xaf   :  { %v762_v61 = vadd.s32 4294967294, %v638_v54  ;;  %v227_v60 = vmul.f32 -2.0, %v222_v5 }
  0xb0   :  { %v228_v44 = vmul.f32 -2.0, %v224_v13 }
  0xb1   :  { %vm763_vm13 = vcmp.lt.s32.totalorder %v762_v61, 0  ;;  %811 = vrsqrt.f32 %v227_v60  ;;  %vm245_vm2 = vcmp.eq.f32.partialorder %v227_v60, inf  ;;  %v248_v32 = vand.u32 2147483648, %v227_v60 }
  0xb2   :  { %v641_v3 = vsel %vm763_vm13, 0, %v762_v61  ;;  %813 = vrsqrt.f32 %v228_v44  ;;  %vm252_vm4 = vcmp.eq.f32.partialorder %v228_v44, inf  ;;  %vm247_vm5 = vcmp.eq.f32.partialorder %v227_v60, 0.0 }
  0xb3   :  { %v642_v49 = vsub.s32 32, %v641_v3  ;;  %v643_v7 = vshll.u32 %v634_v22, %v641_v3  ;;  %v646_v12 = vsub.s32 4294967266, %v641_v3  ;;  %v255_v37 = vand.u32 2147483648, %v228_v44 }
  0xb4   :  { %v808_v25 = vpop.eup %807  ;;  %vm254_vm8 = vcmp.eq.f32.partialorder %v228_v44, 0.0 }
  0xb5   :  { %v644_v15 = vshrl.u32 %v626_v43, %v642_v49  ;;  %v647_v41 = vadd.s32 127, %v646_v12  ;;  %v810_v51 = vpop.eup %809  ;;  %v566_v55 = vxor.u32 2147483648, %v808_v25 }
  0xb6   :  { %v563_v24 = vxor.u32 2147483648, %v810_v51 }
  0xb7   :  { %v645_v21 = vor.u32 %v644_v15, %v643_v7  ;;  %v648_v27 = vshll.u32 %v647_v41, 23  ;;  %v567_v52 = vsel %vm565_vm1, %v566_v55, %v810_v51 }
  0xb8   :  { %v564_v11 = vsel %vm562_vm0, %v808_v25, %v563_v24 }
  0xb9   :  { %v649_v45 = vor.u32 4788187, %v648_v27  ;;  %v652_v38 = vcvt.s32.f32 %v645_v21  ;;  %v568_v17 = vsel %vm561_vm3, %v564_v11, %v567_v52 }
  0xba   :  { %v569_v29 = vsel %vm559_vm6, nan, %v568_v17 }
  0xbb   :  { %v650_v14 = vand.u32 2147483647, %v649_v45  ;;  %v812_v48 = vpop.eup %811 }
  0xbc   :  { %v814_v4 = vpop.eup %813  ;;  %v244_v31 = vmul.f32 %v812_v48, %v227_v60 }
  0xbd   :  { %v653_v1 = vmul.f32 %v652_v38, %v650_v14  ;;  %v251_v59 = vmul.f32 %v814_v4, %v228_v44 }
  0xbe   :  { %v246_v33 = vsel %vm245_vm2, %v227_v60, %v244_v31 }
  0xbf   :  { %v654_v57 = vxor.u32 2147483648, %v653_v1  ;;  %v253_v42 = vsel %vm252_vm4, %v228_v44, %v251_v59  ;;  %v249_v20 = vsel %vm247_vm5, %v248_v32, %v246_v33 }
  0xc0   :  { %v256_v8 = vsel %vm254_vm8, %v255_v37, %v253_v42  ;;  %v675_v26 = vmul.f32 %v569_v29, %v249_v20 }
  0xc1   :  { %v655_v47 = vsel %vm572_vm14, %v654_v57, %v653_v1 }
  0xc2   :  { %v658_v53 = vsel %vm1221_vm15, %v976_v9, %v655_v47 }
  0xc3   :  { %815 = vcosq.f32 %v658_v53 }
  0xc4   :  { %817 = vsinq.f32 %v658_v53 }
  0xcd   :  { %v816_v23 = vpop.eup %815 }
  0xce   :  { %v818_v56 = vpop.eup %817  ;;  %v669_v18 = vxor.u32 2147483648, %v816_v23 }
  0xcf   :  { %v666_v58 = vxor.u32 2147483648, %v818_v56 }
  0xd0   :  { %v670_v22 = vsel %vm668_vm7, %v669_v18, %v818_v56 }
  0xd1   :  { %v667_v46 = vsel %vm665_vm9, %v816_v23, %v666_v58 }
  0xd2   :  { %v671_v40 = vsel %vm664_vm10, %v667_v46, %v670_v22 }
  0xd3   :  { %v672_v50 = vsel %vm662_vm11, nan, %v671_v40 }
  0xd4   :  { %v676_v54 = vmul.f32 %v672_v50, %v256_v8 }
  0xd6   :  { %v682_v61 = vcombine.low %v675_v26, %v676_v54 }
  0xd8   :  { %686 = vst [vmem:[#allocation4 + $0x8] sm:$0xff] %v682_v61 }
  0xd9   :  { %830 = shalt.err (!%p827_p4)
}
  0xda   :  { %s831_s12 = scalar_lea.hbm %s1245_s1, 256 }
  0xdb   :  { %p832_p5 = scmp.ne.s32.totalorder %s1245_s1, %s831_s12  ;;  %p835_p6 = scmp.lt.u32.totalorder %s831_s12, %s1245_s1 }
  0xdd   :  { %p837_p7 = pnand %p835_p6, %p832_p5 }
  0xdf   :  { %840 = shalt.err (!%p837_p7)
}
  0xe0   :  { %696 = dma.vmem_to_hbm [thread:$0]  %s694_s8, 256, %s1245_s1, [#allocation5]  }
  0xe1   :  { %841 = dma.done.wait [#allocation5], 256  }
  0xe2   :  { %842 = vsyncadd [#allocation5], 4294967040 }
  0xe3   :  { %700 = vsyncpa [#allocation5], 1 }

</bundles_post_ra>
